<compile_context>
chip_gen: v7x
topology: tpu7x:2x2x1
jax: 0.10.0
libtpu: 0.0.40
codegen_flags: <defaults>
</compile_context>

<pallas_src>
import jax
import jax.numpy as jnp
from jax.experimental import pallas as pl
from jax.experimental.pallas import tpu as pltpu


def _round_up(a: int, m: int) -> int:
    return ((a + m - 1) // m) * m


def cnn_module_kernel(xw_ref, wconv_ref, bconv_ref, fcw_ref, fcb_ref, out_ref):
    # xw_ref:    (TB, L_out, K*Cin)  bf16   pre-stacked conv windows (tap-major channels)
    # wconv_ref: (K*Cin, Cout)       bf16
    # bconv_ref: (1, Cout)           f32
    # fcw_ref:   (L_out*Cout, Npad)  f32    rows in (t, c) order, cols zero-padded to 128
    # fcb_ref:   (1, Npad)           f32
    # out_ref:   (TB, Npad)          f32
    acc = jax.lax.dot_general(
        xw_ref[...], wconv_ref[...],
        dimension_numbers=(((2,), (0,)), ((), ())),
        preferred_element_type=jnp.float32)            # (TB, L_out, Cout), f32 accumulate
    h = jnp.maximum(acc + bconv_ref[...], 0.0)         # conv bias + ReLU
    # nn.Dropout: identity in inference/eval mode.
    tb, l_out, c_out = h.shape
    h_flat = h.reshape(tb, l_out * c_out)              # flatten in (t, c) order
    out = jax.lax.dot_general(
        h_flat, fcw_ref[...],
        dimension_numbers=(((1,), (0,)), ((), ())),
        preferred_element_type=jnp.float32)            # (TB, Npad), lane-dense
    out_ref[...] = out + fcb_ref[...]


def cnn_module_forward(x, conv_w, conv_b, fc_w, fc_b, kernel_size):
    """x: (B, seq_len, input_size); conv_w: (Cout, Cin, K) [torch layout];
    fc_w: (out_size, Cout*L_out) [torch layout, channel-major flatten]."""
    B, L, Cin = x.shape
    Cout, _, K = conv_w.shape
    assert K == kernel_size
    out_size = fc_w.shape[0]
    pad = (kernel_size - 1) // 2
    Lp = L + 2 * pad
    L_out = Lp - K + 1
    assert fc_w.shape[1] == Cout * L_out, "Linear in_features must be num_channels*(seq_len-1)"

    LANE = 128
    N_pad = _round_up(max(out_size, 1), LANE)          # lane-dense output width
    TB = min(_round_up(B, 8), 128)                     # sublane-aligned batch tile (~MXU M)
    B_pad = _round_up(B, TB)

    # --- activations: bf16, pre-stacked conv windows (one K*Cin-deep contraction) ---
    x_bf = x.astype(jnp.bfloat16)
    if pad > 0:
        x_bf = jnp.pad(x_bf, ((0, 0), (pad, pad), (0, 0)))
    x_win = jnp.concatenate(
        [x_bf[:, tau:tau + L_out, :] for tau in range(K)], axis=-1)   # (B, L_out, K*Cin)
    if B_pad > B:
        x_win = jnp.pad(x_win, ((0, B_pad - B), (0, 0), (0, 0)))

    # --- parameters (layout plumbing done once, outside the hot path) ---
    # (Cout, Cin, K) -> (K*Cin, Cout), tap-major to match the channel stacking above.
    wconv = jnp.transpose(conv_w, (2, 1, 0)).reshape(K * Cin, Cout).astype(jnp.bfloat16)
    bconv = conv_b.reshape(1, Cout).astype(jnp.float32)
    # PyTorch Flatten of (B, Cout, L_out) is channel-major (c*L_out + t); the kernel
    # flattens (t, c), so permute FC rows accordingly and pad the output dim to 128 lanes.
    fcw = (fc_w.reshape(out_size, Cout, L_out)
               .transpose(2, 1, 0)
               .reshape(L_out * Cout, out_size)).astype(jnp.float32)
    fcw = jnp.pad(fcw, ((0, 0), (0, N_pad - out_size)))
    fcb = jnp.pad(fc_b.reshape(1, out_size).astype(jnp.float32),
                  ((0, 0), (0, N_pad - out_size)))

    grid = (B_pad // TB,)
    flops = 2 * B_pad * L_out * (K * Cin) * Cout + 2 * B_pad * (L_out * Cout) * N_pad
    bytes_accessed = (x_win.size * 2 + wconv.size * 2 + bconv.size * 4
                      + fcw.size * 4 + fcb.size * 4 + B_pad * N_pad * 4)

    out_full = pl.pallas_call(
        cnn_module_kernel,
        out_shape=jax.ShapeDtypeStruct((B_pad, N_pad), jnp.float32),
        grid=grid,
        in_specs=[
            pl.BlockSpec((TB, L_out, K * Cin), lambda b: (b, 0, 0)),   # batch-tiled input
            pl.BlockSpec((K * Cin, Cout), lambda b: (0, 0)),           # resident weights
            pl.BlockSpec((1, Cout), lambda b: (0, 0)),
            pl.BlockSpec((L_out * Cout, N_pad), lambda b: (0, 0)),
            pl.BlockSpec((1, N_pad), lambda b: (0, 0)),
        ],
        out_specs=pl.BlockSpec((TB, N_pad), lambda b: (b, 0)),
        compiler_params=pltpu.CompilerParams(
            dimension_semantics=("parallel",),          # megacore-shardable batch axis
            vmem_limit_bytes=32 * 1024 * 1024),         # explicit budget (safe on v5e..v7x)
        cost_estimate=pl.CostEstimate(
            flops=int(flops), transcendentals=0, bytes_accessed=int(bytes_accessed)),
    )(x_win, wconv, bconv, fcw, fcb)

    out = out_full[:B, :out_size]                       # drop batch / lane padding
    # out.squeeze(1): only squeezes if that dim is size 1 (matches torch semantics)
    return out[:, 0] if out_size == 1 else out


def reference_forward(x, conv_w, conv_b, fc_w, fc_b, kernel_size):
    """Pure-JAX reference replicating the PyTorch module exactly (f32)."""
    xp = jnp.transpose(x, (0, 2, 1)).astype(jnp.float32)  # (B, Cin, L)
    pad = (kernel_size - 1) // 2
    conv = jax.lax.conv_general_dilated(
        xp, conv_w.astype(jnp.float32), window_strides=(1,), padding=[(pad, pad)],
        dimension_numbers=("NCH", "OIH", "NCH"))
    conv = conv + conv_b[None, :, None]
    h = jnp.maximum(conv, 0.0)                  # ReLU; dropout = identity (eval)
    h_flat = h.reshape(h.shape[0], -1)          # channel-major flatten
    out = h_flat @ fc_w.T.astype(jnp.float32) + fc_b
    return out[:, 0] if out.shape[1] == 1 else out


if __name__ == "__main__":
    # Small, module-consistent shapes
    B = 2
    seq_len = 8
    input_size = 4        # features per timestep
    num_channels = 16
    kernel_size = 2       # even K => conv output length = seq_len - 1 (matches Linear in_features)
    output_size = 1
    L_out = seq_len - 1

    key = jax.random.PRNGKey(0)
    kx, kcw, kcb, kfw, kfb = jax.random.split(key, 5)

    x = jax.random.normal(kx, (B, seq_len, input_size), dtype=jnp.float32)
    conv_w = 0.1 * jax.random.normal(kcw, (num_channels, input_size, kernel_size), jnp.float32)
    conv_b = 0.1 * jax.random.normal(kcb, (num_channels,), jnp.float32)
    fc_w = 0.1 * jax.random.normal(kfw, (output_size, num_channels * L_out), jnp.float32)
    fc_b = 0.1 * jax.random.normal(kfb, (output_size,), jnp.float32)

    out = cnn_module_forward(x, conv_w, conv_b, fc_w, fc_b, kernel_size)
    out = jax.block_until_ready(out)
    assert out.shape == (B,), out.shape

    # Tight check: reference fed the same bf16-rounded activations/conv weights the kernel
    # uses (f32 accumulation in both paths) -> differences are only f32 summation order.
    x_q = x.astype(jnp.bfloat16).astype(jnp.float32)
    cw_q = conv_w.astype(jnp.bfloat16).astype(jnp.float32)
    ref_q = reference_forward(x_q, cw_q, conv_b, fc_w, fc_b, kernel_size)
    assert jnp.allclose(out, ref_q, atol=1e-4, rtol=1e-4), (out, ref_q)

    # Loose sanity check vs the pure-f32 torch-equivalent path (bounded by bf16 rounding).
    ref_f32 = reference_forward(x, conv_w, conv_b, fc_w, fc_b, kernel_size)
    assert jnp.allclose(out, ref_f32, atol=2e-2, rtol=2e-2), (out, ref_f32)

    print("KERNEL_OK")
</pallas_src>

<mosaic_0001>
module attributes {stable_mosaic.version = 11 : i64} {
  func.func @cnn_module_kernel(%arg0: i32, %arg1: memref<8x7x8xbf16, #tpu.memory_space<vmem>>, %arg2: memref<8x16xbf16, #tpu.memory_space<vmem>>, %arg3: memref<1x16xf32, #tpu.memory_space<vmem>>, %arg4: memref<112x128xf32, #tpu.memory_space<vmem>>, %arg5: memref<1x128xf32, #tpu.memory_space<vmem>>, %arg6: memref<8x128xf32, #tpu.memory_space<vmem>>) attributes {dimension_semantics = [#tpu.dimension_semantics<parallel>], iteration_bounds = array<i64: 1>, scalar_prefetch = 0 : i64, scratch_operands = 0 : i64, tpu.core_type = #tpu.core_type<tc>, window_params = [{transform_indices = @transform_0, window_bounds = array<i64: 8, 7, 8>}, {pipeline_mode = #tpu.pipeline_mode<synchronous>, transform_indices = @transform_1, window_bounds = array<i64: 8, 16>}, {pipeline_mode = #tpu.pipeline_mode<synchronous>, transform_indices = @transform_2, window_bounds = array<i64: 1, 16>}, {pipeline_mode = #tpu.pipeline_mode<synchronous>, transform_indices = @transform_3, window_bounds = array<i64: 112, 128>}, {pipeline_mode = #tpu.pipeline_mode<synchronous>, transform_indices = @transform_4, window_bounds = array<i64: 1, 128>}, {transform_indices = @transform_5, window_bounds = array<i64: 8, 128>}]} {
    %c0 = arith.constant 0 : index
    %c0_0 = arith.constant 0 : index
    %c0_1 = arith.constant 0 : index
    %0 = vector.load %arg1[%c0, %c0_0, %c0_1] : memref<8x7x8xbf16, #tpu.memory_space<vmem>>, vector<8x7x8xbf16>
    %c0_2 = arith.constant 0 : index
    %c0_3 = arith.constant 0 : index
    %1 = vector.load %arg2[%c0_2, %c0_3] : memref<8x16xbf16, #tpu.memory_space<vmem>>, vector<8x16xbf16>
    %cst = arith.constant dense<0.000000e+00> : vector<8x7x16xf32>
    %2 = tpu.matmul %0, %1, %cst {dimension_numbers = #tpu.dot_dimension_numbers<[2], [0], [0, 1], [1], [0, 0, 0, 1, 1, 1], [], []>} : vector<8x7x8xbf16>, vector<8x16xbf16>, vector<8x7x16xf32> -> vector<8x7x16xf32>
    %c0_4 = arith.constant 0 : index
    %c0_5 = arith.constant 0 : index
    %3 = vector.load %arg3[%c0_4, %c0_5] : memref<1x16xf32, #tpu.memory_space<vmem>>, vector<1x16xf32>
    %4 = vector.shape_cast %3 : vector<1x16xf32> to vector<1x1x16xf32>
    %5 = vector.broadcast %4 : vector<1x1x16xf32> to vector<8x7x16xf32>
    %6 = arith.addf %2, %5 : vector<8x7x16xf32>
    %cst_6 = arith.constant 0.000000e+00 : f32
    %7 = vector.broadcast %cst_6 : f32 to vector<8x7x16xf32>
    %8 = arith.maximumf %6, %7 : vector<8x7x16xf32>
    %9 = vector.shape_cast %8 : vector<8x7x16xf32> to vector<8x112xf32>
    %c0_7 = arith.constant 0 : index
    %c0_8 = arith.constant 0 : index
    %10 = vector.load %arg4[%c0_7, %c0_8] : memref<112x128xf32, #tpu.memory_space<vmem>>, vector<112x128xf32>
    %cst_9 = arith.constant dense<0.000000e+00> : vector<8x128xf32>
    %11 = tpu.matmul %9, %10, %cst_9 {dimension_numbers = #tpu.dot_dimension_numbers<[1], [0], [0], [1], [0, 0, 1, 1], [], []>} : vector<8x112xf32>, vector<112x128xf32>, vector<8x128xf32> -> vector<8x128xf32>
    %c0_10 = arith.constant 0 : index
    %c0_11 = arith.constant 0 : index
    %12 = vector.load %arg5[%c0_10, %c0_11] : memref<1x128xf32, #tpu.memory_space<vmem>>, vector<1x128xf32>
    %13 = vector.broadcast %12 : vector<1x128xf32> to vector<8x128xf32>
    %14 = arith.addf %11, %13 : vector<8x128xf32>
    %c0_12 = arith.constant 0 : index
    %c0_13 = arith.constant 0 : index
    %15 = vector.load %arg6[%c0_12, %c0_13] : memref<8x128xf32, #tpu.memory_space<vmem>>, vector<8x128xf32>
    tpu.vector_store %arg6[%c0_12, %c0_13], %14 {strides = array<i32>} : memref<8x128xf32, #tpu.memory_space<vmem>>, vector<8x128xf32>,
    return
  }
  func.func @transform_0(%arg0: i32) -> (i32, i32, i32) {
    %c0_i32 = arith.constant 0 : i32
    %c0_i32_0 = arith.constant 0 : i32
    %c0_i32_1 = arith.constant 0 : i32
    return %arg0, %c0_i32, %c0_i32_0 : i32, i32, i32
  }
  func.func @transform_1(%arg0: i32) -> (i32, i32) {
    %c0_i32 = arith.constant 0 : i32
    %c0_i32_0 = arith.constant 0 : i32
    %c0_i32_1 = arith.constant 0 : i32
    return %c0_i32, %c0_i32_0 : i32, i32
  }
  func.func @transform_2(%arg0: i32) -> (i32, i32) {
    %c0_i32 = arith.constant 0 : i32
    %c0_i32_0 = arith.constant 0 : i32
    %c0_i32_1 = arith.constant 0 : i32
    return %c0_i32, %c0_i32_0 : i32, i32
  }
  func.func @transform_3(%arg0: i32) -> (i32, i32) {
    %c0_i32 = arith.constant 0 : i32
    %c0_i32_0 = arith.constant 0 : i32
    %c0_i32_1 = arith.constant 0 : i32
    return %c0_i32, %c0_i32_0 : i32, i32
  }
  func.func @transform_4(%arg0: i32) -> (i32, i32) {
    %c0_i32 = arith.constant 0 : i32
    %c0_i32_0 = arith.constant 0 : i32
    %c0_i32_1 = arith.constant 0 : i32
    return %c0_i32, %c0_i32_0 : i32, i32
  }
  func.func @transform_5(%arg0: i32) -> (i32, i32) {
    %c0_i32 = arith.constant 0 : i32
    %c0_i32_0 = arith.constant 0 : i32
    return %arg0, %c0_i32 : i32, i32
  }
}

</mosaic_0001>

<bundles_post_ra>
// kernel: tpu_custom_call.1
= control target key start
LH: loop header
LB: loop body
LE: loop exit
PB: predicated region body
PF: predicated region fallthrough
CT: control target
= control target key end

     0   :  { %10 = vsyncpa [#allocation3], 0  ;;  %s2380_s0 = inlined_call_operand.vmem [shape: bf16[8,7,8], index: 0, kind: input, shape index: {}]   ;;  %s2381_s1 = inlined_call_operand.vmem [shape: bf16[8,16], index: 1, kind: input, shape index: {}]   ;;  %s2382_s2 = inlined_call_operand.vmem [shape: f32[1,16], index: 2, kind: input, shape index: {}]   ;;  %s2383_s3 = inlined_call_operand.hbm [shape: f32[112,128], index: 3, kind: input, shape index: {}]   ;;  %s2384_s4 = inlined_call_operand.vmem [shape: f32[1,128], index: 4, kind: input, shape index: {}]   ;;  %s2385_s5 = inlined_call_operand.hbm [shape: f32[8,128], index: 5, kind: output, shape index: {}]  }
   0x1   :  { %11 = vsyncpa [#allocation4], 0  ;;  %s1941_s18 = smov [#allocation2]   ;;  %s1893_s22 = scalar_lea.hbm %s2383_s3, 1792 }
   0x2   :  { %s23_s19 = sshll.u32 %s1941_s18, 4  ;;  %p1894_p0 = scmp.ne.s32.totalorder %s2383_s3, %s1893_s22  ;;  %s24_s19 = int_to_ptr.vmem [resolvable:$true] %s23_s19 }
   0x3   :  { %p1897_p1 = scmp.lt.u32.totalorder %s1893_s22, %s2383_s3 }
   0x5   :  { %p1899_p2 = pnand %p1897_p1, %p1894_p0 }
   0x7   :  { %1902 = shalt.err (!%p1899_p2)
}
   0x8   :  { %s1903_s27 = scalar_lea.vmem %s24_s19, 1792  ;;  %p1908_p4 = scmp.lt.s32.totalorder %s24_s19, %s24_s19 }
   0x9   :  { %p1904_p3 = scmp.ne.s32.totalorder %s24_s19, %s1903_s27  ;;  %p1909_p5 = scmp.lt.s32.totalorder %s1903_s27, %s1903_s27 }
   0xb   :  { %p1910_p6 = por %p1909_p5, %p1908_p4 }
   0xd   :  { %p1911_p7 = pnand %p1910_p6, %p1904_p3 }
   0xf   :  { %1914 = shalt.err (!%p1911_p7)
}
  0x10   :  { %s1942_s28 = smov 128   ;;  %s1943_s29 = smov 8  }
  0x11   :  { %29 = dma.hbm_to_vmem [thread:$0]  %s2383_s3, 1792, %s24_s19, [#allocation3], %s1942_s28, %s1942_s28, %s1943_s29  }
  0x12   :  { %1937 = dma.done.wait [#allocation3], 1792  }
  0x13   :  { %1938 = vsyncadd [#allocation3], 4294965504  ;;  %v70_v0 = vlaneseq  ;;  %v1944_v1 = vmov 1966171168   ;;  %vm693_vm0 = vcmask 1043456   ;;  %vm680_vm1 = vcmask 64512  }
  0x14   :  { %v68_v2 = vunpack.c.l.s4 %v1944_v1  ;;  %v44_v6 = vld [vmem:[%s2381_s1] sm:$0xf]  ;;  %v1766_v9 = vld.sshfl [vmem:[%s2380_s0 + $0x4] sm:$0x33 pattern:$0x75316420] }
  0x15   :  { %v71_v3 = vshrl.u32 %v70_v0, 7  ;;  %v1765_v7 = vld.sshfl [vmem:[%s2380_s0] sm:$0x33 pattern:$0x75316420]  ;;  %1878 = vmatprep.subr.msk.bf16.mxu0 %vm693_vm0, %v44_v6  ;;  %v695_v8 = vsel %vm693_vm0, %v44_v6, 0  ;;  %v90_v13 = vcombine.high %v1766_v9, %v1766_v9 }
  0x16   :  { %v69_v4 = vunpack.c.0.s8 %v68_v2  ;;  %v66_v10 = vcombine.high %v1765_v7, %v1765_v7  ;;  %1817 = vmatpush3.bf16.msra.mxu0 %v695_v8  ;;  %v1767_v12 = vld.sshfl [vmem:[%s2380_s0 + $0x8] sm:$0x33 pattern:$0x75316420]  ;;  %s1947_s24 = smov 48   ;;  %s1948_s25 = smov 16  }
  0x17   :  { %v114_v17 = vcombine.high %v1767_v12, %v1767_v12  ;;  %v1768_v19 = vld.sshfl [vmem:[%s2380_s0 + $0xc] sm:$0x33 pattern:$0x75316420]  ;;  %s1949_s26 = smov 64   ;;  %s1950_s27 = smov 80  }
  0x18   :  { %v1997_v5 = vsub.s32 %v69_v4, %v71_v3  ;;  %v138_v23 = vcombine.high %v1768_v19, %v1768_v19  ;;  %v1769_v28 = vld.sshfl [vmem:[%s2380_s0 + $0x10] sm:$0x33 pattern:$0x75316420]  ;;  %vm1951_vm2 = vmmov 0   ;;  %s1953_s28 = smov 96  }
  0x19   :  { %v162_v40 = vcombine.high %v1769_v28, %v1769_v28  ;;  %v1770_v57 = vld.sshfl [vmem:[%s2380_s0 + $0x14] sm:$0x33 pattern:$0x75316420]  ;;  %vm1641_vm3 = vcmask 130048   ;;  %vm1643_vm4 = vcmask 261120  }
  0x1a   :  { %v73_v11 = vrot.slane %v1765_v7, %v1997_v5  ;;  %v97_v14 = vrot.slane %v1766_v9, %v1997_v5  ;;  %v80_v15 = vrot.slane %v66_v10, %v1997_v5  ;;  %v121_v18 = vrot.slane %v1767_v12, %v1997_v5  ;;  %v1771_v62 = vld.sshfl [vmem:[%s2380_s0 + $0x18] sm:$0x33 pattern:$0x75316420]  ;;  %s1954_s6 = smov [#allocation5]  }
  0x1b   :  { %v104_v20 = vrot.slane %v90_v13, %v1997_v5  ;;  %v128_v25 = vrot.slane %v114_v17, %v1997_v5  ;;  %v145_v36 = vrot.slane %v1768_v19, %v1997_v5  ;;  %v152_v39 = vrot.slane %v138_v23, %v1997_v5  ;;  %v1772_v3 = vld.sshfl [vmem:[%s2380_s0 + $0x1c] sm:$0x33 pattern:$0x75316420]  ;;  %s1755_s7 = sshll.u32 %s1954_s6, 4  ;;  %s1756_s7 = int_to_ptr.vmem [resolvable:$true] %s1755_s7 }
  0x1c   :  { %v81_v16 = vcombine.high %v73_v11, %v73_v11  ;;  %v105_v21 = vcombine.high %v97_v14, %v97_v14  ;;  %v259_v22 = vunpack.i.h.s16 %v97_v14  ;;  %v82_v24 = vcombine.high %v80_v15, %v80_v15  ;;  %s1915_s8 = scalar_lea.vmem %s1756_s7, 128  ;;  %p1920_p9 = scmp.lt.s32.totalorder %s1756_s7, %s1756_s7 }
  0x1d   :  { %v129_v26 = vcombine.high %v121_v18, %v121_v18  ;;  %v383_v27 = vcombine.low %v73_v11, %v80_v15  ;;  %v106_v29 = vcombine.high %v104_v20, %v104_v20  ;;  %v261_v30 = vunpack.i.h.s16 %v104_v20  ;;  %p1916_p8 = scmp.ne.s32.totalorder %s1756_s7, %s1915_s8  ;;  %p1921_p10 = scmp.lt.s32.totalorder %s1915_s8, %s1915_s8 }
  0x1e   :  { %v263_v31 = vunpack.i.h.s16 %v105_v21  ;;  %v1774_v32 = vpack.i.b16 %v104_v20, %v259_v22  ;;  %v130_v33 = vcombine.high %v128_v25, %v128_v25  ;;  %v1773_v34 = vpack.i.b16 %v97_v14, %v82_v24 }
  0x1f   :  { %v393_v35 = vrot.slane %v383_v27, %v1997_v5  ;;  %v1775_v37 = vpack.i.b16 %v105_v21, %v261_v30  ;;  %v153_v42 = vcombine.high %v145_v36, %v145_v36  ;;  %v169_v43 = vrot.slane %v1769_v28, %v1997_v5  ;;  %p1922_p11 = por %p1921_p10, %p1920_p9 }
  0x20   :  { %v1776_v38 = vpack.i.b16 %v106_v29, %v263_v31  ;;  %v384_v41 = vcombine.low %v81_v16, %v1773_v34  ;;  %v273_v44 = vunpack.i.h.s16 %v145_v36  ;;  %v154_v47 = vcombine.high %v152_v39, %v152_v39 }
  0x21   :  { %v385_v45 = vcombine.low %v1774_v32, %v1775_v37  ;;  %v176_v48 = vrot.slane %v162_v40, %v1997_v5  ;;  %v275_v50 = vunpack.i.h.s16 %v152_v39  ;;  %v277_v51 = vunpack.i.h.s16 %v153_v42  ;;  %p1923_p12 = pnand %p1922_p11, %p1916_p8 }
  0x22   :  { %v386_v46 = vcombine.low %v1776_v38, %v121_v18  ;;  %v400_v49 = vrot.slane %v384_v41, %v1997_v5  ;;  %v1777_v52 = vpack.i.b16 %v145_v36, %v130_v33  ;;  %v1778_v55 = vpack.i.b16 %v152_v39, %v273_v44 }
  0x23   :  { %v407_v53 = vrot.slane %v385_v45, %v1997_v5  ;;  %v432_v56 = vcombine.low %v128_v25, %v129_v26  ;;  %v1779_v59 = vpack.i.b16 %v153_v42, %v275_v50  ;;  %v1780_v60 = vpack.i.b16 %v154_v47, %v277_v51 }
  0x24   :  { %v414_v54 = vrot.slane %v386_v46, %v1997_v5  ;;  %v415_v58 = vcombine.low %v393_v35, %v400_v49  ;;  %v435_v61 = vcombine.low %v169_v43, %v176_v48  ;;  %v433_v0 = vcombine.low %v1777_v52, %v1778_v55 }
  0x25   :  { %v442_v1 = vrot.slane %v432_v56, %v1997_v5  ;;  %v177_v2 = vcombine.high %v169_v43, %v169_v43  ;;  %v434_v6 = vcombine.low %v1779_v59, %v1780_v60  ;;  %v178_v8 = vcombine.high %v176_v48, %v176_v48 }
  0x26   :  { %v416_v63 = vcombine.low %v407_v53, %v414_v54  ;;  %v423_v4 = vrot.slane %v415_v58, %v1997_v5  ;;  %v463_v7 = vrot.slane %v435_v61, %v1997_v5  ;;  %v449_v10 = vrot.slane %v433_v0, %v1997_v5 }
  0x27   :  { %v186_v11 = vcombine.high %v1770_v57, %v1770_v57  ;;  %v193_v12 = vrot.slane %v1770_v57, %v1997_v5  ;;  %v456_v13 = vrot.slane %v434_v6, %v1997_v5  ;;  %v210_v14 = vcombine.high %v1771_v62, %v1771_v62 }
  0x28   :  { %v430_v9 = vrot.slane %v416_v63, %v1997_v5  ;;  %v217_v15 = vrot.slane %v1771_v62, %v1997_v5  ;;  %v234_v16 = vcombine.high %v1772_v3, %v1772_v3  ;;  %v464_v18 = vcombine.low %v442_v1, %v449_v10  ;;  %v1657_v10 = vld [vmem:[#allocation2 + $0x20] sm:$0xff] }
  0x29   :  { %v200_v19 = vrot.slane %v186_v11, %v1997_v5  ;;  %v201_v20 = vcombine.high %v193_v12, %v193_v12  ;;  %v465_v21 = vcombine.low %v456_v13, %v463_v7  ;;  %v224_v22 = vrot.slane %v210_v14, %v1997_v5  ;;  %v1658_v11 = vld [vmem:[#allocation2 + $0x28] sm:$0xff]  ;;  %v1659_v13 = vld [vmem:[#allocation2 + $0x30] sm:$0xff]  ;;  %v1660_v14 = vld [vmem:[#allocation2 + $0x38] sm:$0xff] }
  0x2a   :  { %v431_v17 = vcombine.low %v423_v4, %v430_v9  ;;  %v225_v23 = vcombine.high %v217_v15, %v217_v15  ;;  %v287_v24 = vunpack.i.h.s16 %v193_v12  ;;  %v472_v25 = vrot.slane %v464_v18, %v1997_v5  ;;  %v1655_v4 = vld [vmem:[#allocation2 + $0x10] sm:$0xff] }
  0x2b   :  { %v202_v26 = vcombine.high %v200_v19, %v200_v19  ;;  %v289_v27 = vunpack.i.h.s16 %v200_v19  ;;  %v291_v28 = vunpack.i.h.s16 %v201_v20  ;;  %v479_v29 = vrot.slane %v465_v21, %v1997_v5 }
  0x2c   :  { %1818 = vmatprep.mubr.msk.bf16.mxu0 %vm680_vm1, %v431_v17  ;;  %v1781_v30 = vpack.i.b16 %v193_v12, %v178_v8  ;;  %v1782_v31 = vpack.i.b16 %v200_v19, %v287_v24  ;;  %v484_v32 = vcombine.low %v224_v22, %v225_v23  ;;  %v226_v35 = vcombine.high %v224_v22, %v224_v22  ;;  %v1656_v8 = vld [vmem:[#allocation2 + $0x18] sm:$0xff] }
  0x2d   :  { %v1783_v33 = vpack.i.b16 %v201_v20, %v289_v27  ;;  %v1784_v34 = vpack.i.b16 %v202_v26, %v291_v28  ;;  %v241_v36 = vrot.slane %v1772_v3, %v1997_v5  ;;  %v480_v37 = vcombine.low %v472_v25, %v479_v29  ;;  %v1654_v3 = vld [vmem:[#allocation2 + $0x8] sm:$0xff] }
  0x2e   :  { %v481_v38 = vcombine.low %v177_v2, %v1781_v30  ;;  %v512_v39 = vrot.slane %v484_v32, %v1997_v5  ;;  %v248_v40 = vrot.slane %v234_v16, %v1997_v5  ;;  %v1653_v2 = vld [vmem:[#allocation2] sm:$0xff]  ;;  %v1945_v6 = vmov 0.0|0.0  }
  0x2f   :  { %v482_v41 = vcombine.low %v1782_v31, %v1783_v33  ;;  %v483_v42 = vcombine.low %v1784_v34, %v217_v15  ;;  %v249_v43 = vcombine.high %v241_v36, %v241_v36  ;;  %v301_v44 = vunpack.i.h.s16 %v241_v36  ;;  %1819 = vmatmul.mubr.msk.bf16.vlgmr.msra.gmra.mrb[0].mxu0 %vm680_vm1, %v480_v37  ;;  %1857 = vmatprep.subr.bf16.mxu1 %v1945_v6  ;;  %v1764_v16 = vld [vmem:[%s2382_s2] ss:$0 sm:$0xff]  ;;  %s1946_s2 = smov 32  }
  0x30   :  { %v491_v45 = vrot.slane %v481_v38, %v1997_v5  ;;  %v250_v46 = vcombine.high %v248_v40, %v248_v40  ;;  %v303_v47 = vunpack.i.h.s16 %v248_v40  ;;  %v1785_v48 = vpack.i.b16 %v241_v36, %v226_v35 }
  0x31   :  { %v498_v49 = vrot.slane %v482_v41, %v1997_v5  ;;  %v505_v50 = vrot.slane %v483_v42, %v1997_v5  ;;  %v305_v51 = vunpack.i.h.s16 %v249_v43  ;;  %v1786_v52 = vpack.i.b16 %v248_v40, %v301_v44 }
  0x32   :  { %v1787_v53 = vpack.i.b16 %v249_v43, %v303_v47  ;;  %v1858_v7 = vpack.c.bf16 %v1654_v3, %v1653_v2  ;;  %v1861_v9 = vpack.c.bf16 %v1656_v8, %v1655_v4  ;;  %v1864_v12 = vpack.c.bf16 %v1658_v11, %v1657_v10 }
  0x33   :  { %v513_v54 = vcombine.low %v491_v45, %v498_v49  ;;  %v514_v55 = vcombine.low %v505_v50, %v512_v39  ;;  %v1788_v56 = vpack.i.b16 %v250_v46, %v305_v51  ;;  %v530_v57 = vcombine.low %v1785_v48, %v1786_v52 }
  0x34   :  { %1859 = vmatpush3.bf16.msra.mxu1 %v1858_v7  ;;  %v1867_v15 = vpack.c.bf16 %v1660_v14, %v1659_v13  ;;  %v307_v17 = vcombine.high %v1764_v16, %v1764_v16  ;;  %v314_v18 = vrot.slane %v1764_v16, %v1997_v5  ;;  %vm1645_vm5 = vcmask 392192  }
  0x35   :  { %v521_v58 = vrot.slane %v513_v54, %v1997_v5  ;;  %v528_v59 = vrot.slane %v514_v55, %v1997_v5  ;;  %v531_v60 = vcombine.low %v1787_v53, %v1788_v56  ;;  %v538_v61 = vrot.slane %v530_v57, %v1997_v5  ;;  %1860 = vmatprep.subr.bf16.mxu1 %v1945_v6 }
  0x36   :  { %v321_v19 = vrot.slane %v307_v17, %v1997_v5  ;;  %v322_v20 = vcombine.high %v314_v18, %v314_v18  ;;  %v330_v22 = vrot.slane %v314_v18, %v1997_v5  ;;  %vm1647_vm6 = vcmask 523264  }
  0x37   :  { %v529_v62 = vcombine.low %v521_v58, %v528_v59  ;;  %v545_v63 = vrot.slane %v531_v60, %v1997_v5  ;;  %vm1649_vm7 = vcmask 654336   ;;  %vm1651_vm8 = vcmask 785408  }
  0x38   :  { %1862 = vmatpush3.bf16.msra.mxu1 %v1861_v9  ;;  %v323_v21 = vcombine.high %v321_v19, %v321_v19  ;;  %v337_v23 = vrot.slane %v321_v19, %v1997_v5  ;;  %v344_v24 = vrot.slane %v322_v20, %v1997_v5  ;;  %v352_v26 = vcombine.high %v330_v22, %v330_v22 }
  0x39   :  { %1822 = vmatprep.mubr.msk.bf16.mxu0 %vm680_vm1, %v529_v62  ;;  %v546_v0 = vcombine.low %v538_v61, %v545_v63  ;;  %1863 = vmatprep.subr.bf16.mxu1 %v1945_v6  ;;  %vm1674_vm9 = vcmask 916480  }
  0x3a   :  { %v351_v25 = vrot.slane %v323_v21, %v1997_v5  ;;  %v353_v27 = vcombine.high %v337_v23, %v337_v23  ;;  %v354_v28 = vcombine.high %v344_v24, %v344_v24  ;;  %v1789_v29 = vcombine.high %v330_v22, %v344_v24 }
  0x3b   :  { %v553_v1 = vrot.slane %v546_v0, %v1997_v5  ;;  %v603_v32 = vcombine.low %v344_v24, %v352_v26  ;;  %v554_v33 = vcombine.low %v330_v22, %v344_v24 }
  0x3c   :  { %1865 = vmatpush3.bf16.msra.mxu1 %v1864_v12  ;;  %v556_v30 = vcombine.low %v337_v23, %v351_v25  ;;  %v557_v31 = vcombine.low %v353_v27, %v330_v22  ;;  %v604_v34 = vcombine.low %v354_v28, %v337_v23  ;;  %v605_v35 = vcombine.low %v351_v25, %v353_v27 }
  0x3d   :  { %1823 = vmatmul.mubr.msk.bf16.gmra.mrb[4].mxu0 %vm680_vm1, %v553_v1  ;;  %1866 = vmatprep.subr.bf16.mxu1 %v1945_v6  ;;  %v571_v36 = vrot.slane %v1789_v29, %v1997_v5  ;;  %v612_v39 = vrot.slane %v603_v32, %v1997_v5  ;;  %v564_v40 = vrot.slane %v554_v33, %v1997_v5 }
  0x3e   :  { %v578_v37 = vrot.slane %v556_v30, %v1997_v5  ;;  %v585_v38 = vrot.slane %v557_v31, %v1997_v5  ;;  %v619_v41 = vrot.slane %v604_v34, %v1997_v5  ;;  %v626_v42 = vrot.slane %v605_v35, %v1997_v5 }
  0x3f   :  { %v586_v45 = vcombine.low %v564_v40, %v571_v36 }
  0x40   :  { %1868 = vmatpush3.bf16.msra.mxu1 %v1867_v15  ;;  %v644_v43 = vcombine.low %v571_v36, %v578_v37  ;;  %v645_v44 = vcombine.low %v585_v38, %v612_v39  ;;  %v587_v46 = vcombine.low %v578_v37, %v585_v38  ;;  %v661_v47 = vcombine.low %v619_v41, %v626_v42 }
  0x41   :  { %1869 = vmatprep.subr.bf16.mxu1 %v1945_v6  ;;  %v627_v48 = vcombine.low %v612_v39, %v619_v41  ;;  %v628_v49 = vcombine.low %v626_v42, %v564_v40  ;;  %v594_v52 = vrot.slane %v586_v45, %v1997_v5 }
  0x42   :  { %v2089_v50 = vrot.slane %v644_v43, %v1997_v5  ;;  %v2092_v51 = vrot.slane %v645_v44, %v1997_v5  ;;  %v2096_v53 = vrot.slane %v587_v46, %v1997_v5  ;;  %v2099_v54 = vrot.slane %v661_v47, %v1997_v5 }
  0x43   :  { %v2102_v55 = vrot.slane %v627_v48, %v1997_v5  ;;  %v2105_v56 = vrot.slane %v628_v49, %v1997_v5 }
  0x44   :  { %v660_v57 = vcombine.low %v2089_v50, %v2092_v51  ;;  %v602_v58 = vcombine.low %v594_v52, %v2096_v53  ;;  %v669_v59 = vcombine.low %v2099_v54, %v594_v52  ;;  %v672_v2 = vcombine.low %v2092_v51, %v2099_v54 }
  0x45   :  { %v643_v61 = vcombine.low %v2102_v55, %v2105_v56  ;;  %v670_v9 = vcombine.low %v2096_v53, %v2102_v55  ;;  %v671_v13 = vcombine.low %v2105_v56, %v2089_v50 }
 0x102   :  { %v1820_v60 = vpop.f32.mrb[0].mxu0 }
 0x103   :  { %v740_v62 = vadd.f32 %v1820_v60, %v660_v57  ;;  %v731_v63 = vpop.f32.mrb[1].mxu0 }
 0x104   :  { %v732_v0 = vadd.f32 %v731_v63, %v602_v58  ;;  %v1821_v1 = vpop.f32.mrb[2].mxu0 }
 0x105   :  { %v866_v3 = vcombine.high %v740_v62, %v740_v62  ;;  %v873_v4 = vrot.slane %v740_v62, %v1997_v5  ;;  %v743_v7 = vadd.f32 %v1821_v1, %v669_v59  ;;  %v734_v8 = vpop.f32.mrb[3].mxu0 }
 0x106   :  { %v768_v10 = vcombine.high %v732_v0, %v732_v0  ;;  %v775_v11 = vrot.slane %v732_v0, %v1997_v5  ;;  %v735_v12 = vadd.f32 %v734_v8, %v643_v61 }
 0x107   :  { %v880_v14 = vrot.slane %v866_v3, %v1997_v5  ;;  %v881_v15 = vcombine.high %v873_v4, %v873_v4  ;;  %v889_v16 = vrot.slane %v873_v4, %v1997_v5  ;;  %v915_v17 = vcombine.high %v743_v7, %v743_v7 }
 0x108   :  { %v782_v18 = vrot.slane %v768_v10, %v1997_v5  ;;  %v783_v19 = vcombine.high %v775_v11, %v775_v11  ;;  %v791_v20 = vrot.slane %v775_v11, %v1997_v5  ;;  %v922_v21 = vrot.slane %v743_v7, %v1997_v5 }
 0x109   :  { %v882_v22 = vcombine.high %v880_v14, %v880_v14  ;;  %v2127_v23 = vrot.slane %v880_v14, %v1997_v5  ;;  %v903_v24 = vrot.slane %v881_v15, %v1997_v5  ;;  %v911_v25 = vcombine.high %v889_v16, %v889_v16 }
 0x10a   :  { %v1183_v26 = vmax.f32 %v889_v16, 0.0  ;;  %v784_v27 = vcombine.high %v782_v18, %v782_v18  ;;  %v2131_v28 = vrot.slane %v782_v18, %v1997_v5  ;;  %v2134_v29 = vrot.slane %v783_v19, %v1997_v5 }
 0x10b   :  { %v2137_v30 = vrot.slane %v882_v22, %v1997_v5  ;;  %v912_v31 = vcombine.high %v2127_v23, %v2127_v23  ;;  %v913_v32 = vcombine.high %v903_v24, %v903_v24  ;;  %v1184_v33 = vmax.f32 %v903_v24, 0.0 }
 0x10c   :  { %v1185_v34 = vmax.f32 %v911_v25, 0.0  ;;  %v1187_v35 = vmax.f32 %v2127_v23, 0.0  ;;  %v2143_v36 = vrot.slane %v784_v27, %v1997_v5  ;;  %v813_v37 = vcombine.high %v791_v20, %v791_v20 }
 0x10d   :  { %v914_v38 = vcombine.high %v2137_v30, %v2137_v30  ;;  %v2147_v39 = vmax.f32 %v913_v32, 0.0  ;;  %v1188_v40 = vmax.f32 %v2137_v30, 0.0  ;;  %v2150_v41 = vmax.f32 %v912_v31, 0.0 }
 0x10e   :  { %v814_v42 = vcombine.high %v2131_v28, %v2131_v28  ;;  %v815_v43 = vcombine.high %v2134_v29, %v2134_v29  ;;  %v816_v44 = vcombine.high %v2143_v36, %v2143_v36  ;;  %v1167_v45 = vmax.f32 %v791_v20, 0.0 }
 0x10f   :  { %v1190_v46 = vmax.f32 %v914_v38, 0.0  ;;  %v1168_v47 = vmax.f32 %v2134_v29, 0.0  ;;  %v2159_v48 = vmax.f32 %v813_v37, 0.0  ;;  %v1171_v49 = vmax.f32 %v2131_v28, 0.0 }
 0x110   :  { %v1824_v51 = vpop.f32.mrb[4].mxu0  ;;  %v2162_v52 = vmax.f32 %v815_v43, 0.0  ;;  %v1172_v54 = vmax.f32 %v2143_v36, 0.0  ;;  %v2165_v57 = vmax.f32 %v814_v42, 0.0  ;;  %v1174_v58 = vmax.f32 %v816_v44, 0.0 }
 0x111   :  { %v747_v59 = vpop.f32.mrb[5].mxu0  ;;  %v2167_v60 = vcombine.low %v1183_v26, %v1190_v46  ;;  %v929_v61 = vrot.slane %v915_v17, %v1997_v5  ;;  %v930_v62 = vcombine.high %v922_v21, %v922_v21  ;;  %v938_v63 = vrot.slane %v922_v21, %v1997_v5 }
 0x112   :  { %v1825_v0 = vpop.f32.mrb[6].mxu0  ;;  %v2171_v1 = vcombine.low %v1167_v45, %v1174_v58  ;;  %v817_v3 = vcombine.high %v735_v12, %v735_v12  ;;  %v824_v4 = vrot.slane %v735_v12, %v1997_v5  ;;  %v756_v7 = vadd.f32 %v1824_v51, %v672_v2 }
 0x113   :  { %v750_v8 = vpop.f32.mrb[7].mxu0  ;;  %v931_v10 = vcombine.high %v929_v61, %v929_v61  ;;  %v2175_v11 = vrot.slane %v929_v61, %v1997_v5  ;;  %v952_v14 = vrot.slane %v930_v62, %v1997_v5  ;;  %v960_v15 = vcombine.high %v938_v63, %v938_v63 }
 0x114   :  { %v1241_v16 = vrot.slane %v2171_v1, %v1997_v5  ;;  %v1191_v17 = vmax.f32 %v938_v63, 0.0  ;;  %v831_v18 = vrot.slane %v817_v3, %v1997_v5  ;;  %v832_v19 = vcombine.high %v824_v4, %v824_v4 }
 0x115   :  { %v2182_v20 = vrot.slane %v931_v10, %v1997_v5  ;;  %v961_v2 = vcombine.high %v2175_v11, %v2175_v11  ;;  %v962_v12 = vcombine.high %v952_v14, %v952_v14  ;;  %v1192_v21 = vmax.f32 %v952_v14, 0.0 }
 0x116   :  { %v2186_v22 = vmax.f32 %v960_v15, 0.0  ;;  %v1195_v23 = vmax.f32 %v2175_v11, 0.0  ;;  %v2189_v24 = vcombine.low %v1184_v33, %v1191_v17  ;;  %v833_v25 = vcombine.high %v831_v18, %v831_v18 }
 0x117   :  { %v963_v26 = vcombine.high %v2182_v20, %v2182_v20  ;;  %v1194_v27 = vmax.f32 %v962_v12, 0.0  ;;  %v1196_v29 = vmax.f32 %v2182_v20, 0.0  ;;  %v2194_v31 = vmax.f32 %v961_v2, 0.0 }
 0x118   :  { %v2196_v32 = vcombine.low %v1185_v34, %v1192_v21  ;;  %v1530_v36 = vcombine.low %v2147_v39, %v2186_v22  ;;  %v840_v37 = vrot.slane %v824_v4, %v1997_v5  ;;  %v847_v38 = vrot.slane %v831_v18, %v1997_v5 }
 0x119   :  { %v2202_v33 = vmax.f32 %v963_v26, 0.0  ;;  %v2204_v42 = vcombine.low %v1187_v35, %v1194_v27  ;;  %v2207_v43 = vrot.slane %v832_v19, %v1997_v5  ;;  %v2210_v44 = vrot.slane %v833_v25, %v1997_v5 }
 0x11a   :  { %v862_v45 = vcombine.high %v840_v37, %v840_v37  ;;  %v863_v34 = vcombine.high %v847_v38, %v847_v38  ;;  %v1175_v46 = vmax.f32 %v840_v37, 0.0  ;;  %v1179_v51 = vmax.f32 %v847_v38, 0.0 }
 0x11b   :  { %v864_v58 = vcombine.high %v2207_v43, %v2207_v43  ;;  %v865_v61 = vcombine.high %v2210_v44, %v2210_v44  ;;  %v1176_v62 = vmax.f32 %v2207_v43, 0.0  ;;  %v1180_v35 = vmax.f32 %v2210_v44, 0.0 }
 0x11c   :  { %v2218_v63 = vmax.f32 %v862_v45, 0.0  ;;  %v1181_v0 = vmax.f32 %v863_v34, 0.0  ;;  %v2220_v3 = vcombine.low %v1168_v47, %v1175_v46  ;;  %v2222_v4 = vcombine.low %v1172_v54, %v1179_v51 }
 0x11d   :  { %v1178_v10 = vmax.f32 %v864_v58, 0.0  ;;  %v2224_v14 = vmax.f32 %v865_v61, 0.0  ;;  %v1062_v15 = vcombine.high %v756_v7, %v756_v7  ;;  %v1069_v17 = vrot.slane %v756_v7, %v1997_v5 }
 0x11e   :  { %v2229_v18 = vcombine.low %v1181_v0, %v1188_v40  ;;  %v1409_v19 = vcombine.low %v2162_v52, %v2218_v63  ;;  %v748_v47 = vadd.f32 %v747_v59, %v670_v9  ;;  %v751_v54 = vadd.f32 %v750_v8, %v671_v13 }
 0x11f   :  { %v2241_v2 = vcombine.low %v1171_v49, %v1178_v10  ;;  %v1076_v7 = vrot.slane %v1062_v15, %v1997_v5  ;;  %v1077_v30 = vcombine.high %v1069_v17, %v1069_v17  ;;  %v1085_v40 = vrot.slane %v1069_v17, %v1997_v5 }
 0x120   :  { %v964_v12 = vcombine.high %v748_v47, %v748_v47  ;;  %v971_v21 = vrot.slane %v748_v47, %v1997_v5  ;;  %v1013_v25 = vcombine.high %v751_v54, %v751_v54  ;;  %v1020_v53 = vrot.slane %v751_v54, %v1997_v5 }
 0x121   :  { %v1078_v55 = vcombine.high %v1076_v7, %v1076_v7  ;;  %v2248_v9 = vrot.slane %v1076_v7, %v1997_v5  ;;  %v2251_v50 = vrot.slane %v1077_v30, %v1997_v5  ;;  %v1107_v56 = vcombine.high %v1085_v40, %v1085_v40 }
 0x122   :  { %v1215_v13 = vmax.f32 %v1085_v40, 0.0  ;;  %v978_v28 = vrot.slane %v964_v12, %v1997_v5  ;;  %v979_v49 = vcombine.high %v971_v21, %v971_v21  ;;  %v987_v59 = vrot.slane %v971_v21, %v1997_v5 }
 0x123   :  { %v1106_v8 = vrot.slane %v1078_v55, %v1997_v5  ;;  %v1108_v26 = vcombine.high %v2248_v9, %v2248_v9  ;;  %v1109_v27 = vcombine.high %v2251_v50, %v2251_v50  ;;  %v1216_v37 = vmax.f32 %v2251_v50, 0.0 }
 0x124   :  { %v2261_v38 = vmax.f32 %v1107_v56, 0.0  ;;  %v1219_v45 = vmax.f32 %v2248_v9, 0.0  ;;  %v980_v34 = vcombine.high %v978_v28, %v978_v28  ;;  %v994_v46 = vrot.slane %v978_v28, %v1997_v5 }
 0x125   :  { %v1110_v51 = vcombine.high %v1106_v8, %v1106_v8  ;;  %v1218_v58 = vmax.f32 %v1109_v27, 0.0  ;;  %v1220_v61 = vmax.f32 %v1106_v8, 0.0  ;;  %v2265_v0 = vmax.f32 %v1108_v26, 0.0 }
 0x126   :  { %v1001_v10 = vrot.slane %v979_v49, %v1997_v5  ;;  %v1008_v15 = vrot.slane %v980_v34, %v1997_v5  ;;  %v1009_v17 = vcombine.high %v987_v59, %v987_v59  ;;  %v1010_v47 = vcombine.high %v994_v46, %v994_v46 }
 0x127   :  { %v1222_v54 = vmax.f32 %v1110_v51, 0.0  ;;  %v1199_v7 = vmax.f32 %v987_v59, 0.0  ;;  %v1203_v30 = vmax.f32 %v994_v46, 0.0  ;;  %v1027_v40 = vrot.slane %v1013_v25, %v1997_v5 }
 0x128   :  { %v1011_v12 = vcombine.high %v1001_v10, %v1001_v10  ;;  %v1012_v21 = vcombine.high %v1008_v15, %v1008_v15  ;;  %v1200_v55 = vmax.f32 %v1001_v10, 0.0  ;;  %v1201_v9 = vmax.f32 %v1009_v17, 0.0 }
 0x129   :  { %v2270_v50 = vcombine.low %v1215_v13, %v1222_v54  ;;  %v1204_v56 = vmax.f32 %v1008_v15, 0.0  ;;  %v1205_v28 = vmax.f32 %v1010_v47, 0.0  ;;  %v1291_v49 = vcombine.low %v1196_v29, %v1203_v30 }
 0x12a   :  { %v1202_v8 = vmax.f32 %v1011_v12, 0.0  ;;  %v1206_v26 = vmax.f32 %v1012_v21, 0.0  ;;  %v1028_v27 = vcombine.high %v1020_v53, %v1020_v53  ;;  %v1029_v34 = vcombine.high %v1027_v40, %v1027_v40 }
 0x12b   :  { %v1036_v59 = vrot.slane %v1020_v53, %v1997_v5  ;;  %v1043_v46 = vrot.slane %v1027_v40, %v1997_v5  ;;  %v1349_v25 = vcombine.low %v2159_v48, %v1176_v62  ;;  %v1351_v13 = vcombine.low %v2194_v31, %v1204_v56 }
 0x12c   :  { %v2282_v51 = vcombine.low %v1195_v23, %v1202_v8  ;;  %v1471_v20 = vcombine.low %v1199_v7, %v1206_v26  ;;  %v1050_v29 = vrot.slane %v1028_v27, %v1997_v5  ;;  %v1057_v10 = vrot.slane %v1029_v34, %v1997_v5 }
 0x12d   :  { %v1058_v15 = vcombine.high %v1036_v59, %v1036_v59  ;;  %v1059_v17 = vcombine.high %v1043_v46, %v1043_v46  ;;  %v1207_v53 = vmax.f32 %v1036_v59, 0.0  ;;  %v1211_v47 = vmax.f32 %v1043_v46, 0.0 }
 0x12e   :  { %v1060_v54 = vcombine.high %v1050_v29, %v1050_v29  ;;  %v1061_v30 = vcombine.high %v1057_v10, %v1057_v10  ;;  %v1208_v43 = vmax.f32 %v1050_v29, 0.0  ;;  %v1212_v40 = vmax.f32 %v1057_v10, 0.0 }
 0x12f   :  { %v1209_v48 = vmax.f32 %v1058_v15, 0.0  ;;  %v1213_v62 = vmax.f32 %v1059_v17, 0.0  ;;  %v1531_v31 = vcombine.low %v1200_v55, %v1207_v53  ;;  %v1352_v12 = vcombine.low %v1211_v47, %v1218_v58 }
 0x130   :  { %v1210_v11 = vmax.f32 %v1060_v54, 0.0  ;;  %v1214_v23 = vmax.f32 %v1061_v30, 0.0  ;;  %v2286_v21 = vcombine.low %v1201_v9, %v1208_v43  ;;  %v1359_v7 = vrot.slane %v1349_v25, %v1997_v5 }
 0x131   :  { %v2289_v56 = vcombine.low %v1209_v48, %v1216_v37  ;;  %v1472_v8 = vcombine.low %v1213_v62, %v1220_v61  ;;  %v1366_v26 = vrot.slane %v2167_v60, %v1997_v5  ;;  %v1373_v27 = vrot.slane %v1351_v13, %v1997_v5 }
 0x132   :  { %v1292_v34 = vcombine.low %v1210_v11, %v2261_v38  ;;  %v1380_v59 = vrot.slane %v1352_v12, %v1997_v5  ;;  %v1411_v58 = vcombine.low %v2202_v33, %v1205_v28  ;;  %v1412_v55 = vcombine.low %v1212_v40, %v1219_v45  ;;  %v1662_v11 = vld [vmem:[#allocation2 + $0x48] sm:$0xff] }
 0x133   :  { %v1262_v9 = vrot.slane %v2289_v56, %v1997_v5  ;;  %v1381_v46 = vcombine.low %v1359_v7, %v1366_v26  ;;  %v1419_v37 = vrot.slane %v1409_v19, %v1997_v5  ;;  %v1426_v60 = vrot.slane %v2189_v24, %v1997_v5 }
 0x134   :  { %v1382_v61 = vcombine.low %v1373_v27, %v1380_v59  ;;  %v1433_v38 = vrot.slane %v1411_v58, %v1997_v5  ;;  %v1440_v25 = vrot.slane %v1412_v55, %v1997_v5  ;;  %v1290_v33 = vcombine.low %v2224_v14, %v2150_v41  ;;  %v1663_v58 = vld [vmem:[#allocation2 + $0x50] sm:$0xff]  ;;  %v1664_v55 = vld [vmem:[#allocation2 + $0x58] sm:$0xff] }
 0x135   :  { %v1389_v45 = vrot.slane %v1381_v46, %v1997_v5  ;;  %v1441_v28 = vcombine.low %v1419_v37, %v1426_v60  ;;  %v1299_v13 = vrot.slane %v2220_v3, %v1997_v5  ;;  %v1313_v52 = vrot.slane %v1291_v49, %v1997_v5 }
 0x136   :  { %v1396_v63 = vrot.slane %v1382_v61, %v1997_v5  ;;  %v1442_v19 = vcombine.low %v1433_v38, %v1440_v25  ;;  %v1306_v24 = vrot.slane %v1290_v33, %v1997_v5  ;;  %v1320_v29 = vrot.slane %v1292_v34, %v1997_v5  ;;  %v1666_v61 = vld [vmem:[#allocation2 + $0x68] sm:$0xff] }
 0x137   :  { %v1449_v10 = vrot.slane %v1441_v28, %v1997_v5  ;;  %v1479_v41 = vrot.slane %v2241_v2, %v1997_v5  ;;  %v1486_v14 = vrot.slane %v2196_v32, %v1997_v5  ;;  %v1493_v15 = vrot.slane %v1471_v20, %v1997_v5 }
 0x138   :  { %v1397_v3 = vcombine.low %v1389_v45, %v1396_v63  ;;  %v1456_v49 = vrot.slane %v1442_v19, %v1997_v5  ;;  %v1321_v17 = vcombine.low %v1299_v13, %v1306_v24  ;;  %v1322_v53 = vcombine.low %v1313_v52, %v1320_v29 }
 0x139   :  { %v1500_v47 = vrot.slane %v1472_v8, %v1997_v5  ;;  %v1501_v54 = vcombine.low %v1479_v41, %v1486_v14  ;;  %v1532_v30 = vcombine.low %v1214_v23, %v2265_v0  ;;  %v1539_v43 = vrot.slane %v2222_v4, %v1997_v5  ;;  %v1661_v4 = vld [vmem:[#allocation2 + $0x40] sm:$0xff] }
 0x13a   :  { %1398 = vrot.lane.b32.xlu0 %v1397_v3, %s1946_s2  ;;  %v1457_v2 = vcombine.low %v1449_v10, %v1456_v49  ;;  %v1329_v32 = vrot.slane %v1321_v17, %v1997_v5  ;;  %v1336_v20 = vrot.slane %v1322_v53, %v1997_v5  ;;  %v1546_v40 = vrot.slane %v1530_v36, %v1997_v5 }
 0x13b   :  { %v1502_v48 = vcombine.low %v1493_v15, %v1500_v47  ;;  %v1509_v62 = vrot.slane %v1501_v54, %v1997_v5  ;;  %v1553_v0 = vrot.slane %v1531_v31, %v1997_v5  ;;  %v1560_v12 = vrot.slane %v1532_v30, %v1997_v5  ;;  %v1794_v15 = vld [vmem:[%s2384_s4] ss:$0 sm:$0xff] }
 0x13c   :  { %1458 = vrot.lane.b32.xlu1 %v1457_v2, %s1947_s24  ;;  %v1337_v23 = vcombine.low %v1329_v32, %v1336_v20  ;;  %v1561_v7 = vcombine.low %v1539_v43, %v1546_v40  ;;  %v1589_v8 = vcombine.low %v2165_v57, %v1180_v35  ;;  %v1606_v39 = vrot.slane %v2204_v42, %v1997_v5 }
 0x13d   :  { %v1516_v22 = vrot.slane %v1502_v48, %v1997_v5  ;;  %v1562_v36 = vcombine.low %v1553_v0, %v1560_v12  ;;  %v1613_v31 = vrot.slane %v2286_v21, %v1997_v5  ;;  %v1620_v26 = vrot.slane %v2270_v50, %v1997_v5 }
 0x13e   :  { %1338 = vrot.lane.b32.xlu0 %v1337_v23, %s1948_s25  ;;  %v1569_v27 = vrot.slane %v1561_v7, %v1997_v5  ;;  %v1599_v44 = vrot.slane %v1589_v8, %v1997_v5  ;;  %v1870_v34 = vpack.c.bf16 %v1662_v11, %v1661_v4  ;;  %v1248_v57 = vrot.slane %v2229_v18, %v1997_v5 }
 0x13f   :  { %v1517_v42 = vcombine.low %v1509_v62, %v1516_v22  ;;  %v1576_v35 = vrot.slane %v1562_v36, %v1997_v5  ;;  %v1622_v59 = vcombine.low %v1613_v31, %v1620_v26  ;;  %v1255_v21 = vrot.slane %v2282_v51, %v1997_v5  ;;  %v1665_v51 = vld [vmem:[#allocation2 + $0x60] sm:$0xff] }
 0x140   :  { %v1621_v50 = vcombine.low %v1599_v44, %v1606_v39  ;;  %1871 = vmatpush3.bf16.msra.mxu1 %v1870_v34  ;;  %v1263_v46 = vcombine.low %v1241_v16, %v1248_v57  ;;  %v1873_v25 = vpack.c.bf16 %v1664_v55, %v1663_v58  ;;  %v1876_v45 = vpack.c.bf16 %v1666_v61, %v1665_v51 }
 0x141   :  { %1518 = vrot.lane.b32.xlu1 %v1517_v42, %s1949_s26  ;;  %v1577_v37 = vcombine.low %v1569_v27, %v1576_v35  ;;  %v1636_v18 = vrot.slane %v1622_v59, %v1997_v5  ;;  %1872 = vmatprep.subr.bf16.mxu1 %v1945_v6  ;;  %v1264_v60 = vcombine.low %v1255_v21, %v1262_v9  ;;  %v1952_v56 = vmov 0.0  }
 0x142   :  { %v1629_v38 = vrot.slane %v1621_v50, %v1997_v5  ;;  %v1271_v16 = vrot.slane %v1263_v46, %v1997_v5  ;;  %1854 = vmatprep.mubr.msk.f32.mxu1 %vm1951_vm2, %v1952_v56 }
 0x143   :  { %1578 = vrot.lane.b32.xlu0 %v1577_v37, %s1950_s27  ;;  %v1278_v1 = vrot.slane %v1264_v60, %v1997_v5 }
 0x144   :  { %v1637_v33 = vcombine.low %v1629_v38, %v1636_v18  ;;  %1874 = vmatpush3.bf16.msra.mxu1 %v1873_v25 }
 0x145   :  { %v1279_v28 = vcombine.low %v1271_v16, %v1278_v1  ;;  %1875 = vmatprep.subr.bf16.mxu1 %v1945_v6 }
 0x146   :  { %1638 = vrot.lane.b32.xlu1 %v1637_v33, %s1953_s28 }
 0x148   :  { %1877 = vmatpush3.bf16.msra.mxu1 %v1876_v45 }
 0x1ac   :  { %v1399_v9 = vpop.permute.xlu0 %1398 }
 0x1ae   :  { %v1459_v13 = vpop.permute.xlu1 %1458 }
 0x1b0   :  { %v1339_v52 = vpop.permute.xlu0 %1338 }
 0x1b1   :  { %v1642_v63 = vsel %vm1641_vm3, %v1279_v28, %v1339_v52 }
 0x1b2   :  { %v1644_v5 = vsel %vm1643_vm4, %v1642_v63, %v1399_v9 }
 0x1b3   :  { %v1519_v19 = vpop.permute.xlu1 %1518  ;;  %v1646_v24 = vsel %vm1645_vm5, %v1644_v5, %v1459_v13 }
 0x1b4   :  { %v1648_v29 = vsel %vm1647_vm6, %v1646_v24, %v1519_v19 }
 0x1b5   :  { %v1579_v6 = vpop.permute.xlu0 %1578 }
 0x1b6   :  { %v1650_v10 = vsel %vm1649_vm7, %v1648_v29, %v1579_v6 }
 0x1b8   :  { %v1639_v41 = vpop.permute.xlu1 %1638 }
 0x1b9   :  { %v1652_v14 = vsel %vm1651_vm8, %v1650_v10, %v1639_v41 }
 0x1ba   :  { %1855 = vmatmul.mubr.msk.f32.vlgmr.msra.gmra.mrb[0].mxu1 %vm1674_vm9, %v1652_v14 }
 0x28d   :  { %v1744_v3 = vpop.f32.mrb[0].mxu1 }
 0x28e   :  { %v1745_v49 = vadd.f32 %v1794_v15, %v1744_v3  ;;  %v1856_v17 = vpop.f32.mrb[1].mxu1 }
 0x290   :  { %1748 = vst [vmem:[#allocation5] sm:$0xff] %v1745_v49 }
 0x291   :  { %1926 = shalt.err (!%p1923_p12)
}
 0x292   :  { %s1927_s3 = scalar_lea.hbm %s2385_s5, 128 }
 0x293   :  { %p1928_p13 = scmp.ne.s32.totalorder %s2385_s5, %s1927_s3  ;;  %p1931_p0 = scmp.lt.u32.totalorder %s1927_s3, %s2385_s5 }
 0x295   :  { %p1933_p1 = pnand %p1931_p0, %p1928_p13 }
 0x297   :  { %1936 = shalt.err (!%p1933_p1)
}
 0x298   :  { %1758 = dma.vmem_to_hbm [thread:$0]  %s1756_s7, 128, %s2385_s5, [#allocation4]  }
 0x299   :  { %1939 = dma.done.wait [#allocation4], 128  }
 0x29a   :  { %1940 = vsyncadd [#allocation4], 4294967168 }
 0x29b   :  { %1762 = vsyncpa [#allocation3], 1 }
 0x29c   :  { %1763 = vsyncpa [#allocation4], 1 }

</bundles_post_ra>
